<compile_context>
chip_gen: v6e
topology: v6e:2x2x1
jax: 0.10.0
libtpu: 0.0.40
codegen_flags: <defaults>
</compile_context>

<pallas_src>
import jax
import jax.numpy as jnp
import numpy as np
from jax import lax
from jax.experimental import pallas as pl
from jax.experimental.pallas import tpu as pltpu


def _msrsa_kernel(wA_ref, wD_ref,            # scalar-prefetch (SMEM): (h,) each
                  q_ref, k_ref, v_ref,       # (1,1,tq,D) / (1,1,L,D) VMEM tiles
                  a_ref, d_ref, m_ref,       # (1,tq,L) / (1,tq,L) / (1,1,L)
                  out_ref, attn_ref):        # (1,1,tq,D) / (1,1,tq,L)
    h = pl.program_id(2)

    q = q_ref[0, 0]                          # (tq, D)  (bf16)
    k = k_ref[0, 0]                          # (L, D)   (bf16)
    v = v_ref[0, 0]                          # (L, D)   (bf16)
    a = a_ref[0]                             # (tq, L)  f32
    ds = d_ref[0]                            # (tq, L)  f32
    m = m_ref[0]                             # (1, L)   f32 key mask, row-broadcast

    # attn_score = Q @ K^T  (contract last dims; no explicit transpose of K)
    s = lax.dot_general(q, k, (((1,), (1,)), ((), ())),
                        preferred_element_type=jnp.float32)      # (tq, L) f32

    # mask_attention_score(attn_score, M, 0.0): fill masked (mask==0) entries with 0.0
    s = jnp.where(m != 0.0, s, 0.0)

    # Fused bias + scale:  (s + s*A*wA + s*D*wD) / sqrt(D) == s * (1 + A*wA + D*wD) / sqrt(D)
    wA = wA_ref[h]
    wD = wD_ref[h]
    inv_scale = jnp.float32(1.0 / (q_ref.shape[-1] ** 0.5))
    bias = (1.0 + a * wA + ds * wD) * inv_scale
    s = s * bias

    # softmax along last axis (f32), reciprocal on the EUP instead of a VPU divide
    s_max = jnp.max(s, axis=-1, keepdims=True)
    p = jnp.exp(s - s_max)
    denom = jnp.sum(p, axis=-1, keepdims=True)
    w = p * pl.reciprocal(denom, approx=False)

    out = jnp.dot(w.astype(v.dtype), v, preferred_element_type=jnp.float32)

    out_ref[0, 0] = out.astype(out_ref.dtype)
    attn_ref[0, 0] = w.astype(attn_ref.dtype)


def _pick_tq(L):
    """Query-row tile. Multiple of the sublane (8) when it splits L; else full L."""
    for cand in (512, 256, 128):
        if L % cand == 0 and L > cand:
            return cand
    return L


def _vmem_limit_bytes(tq, L, D, qkv_itemsize, attn_itemsize):
    per_step = (tq * D * qkv_itemsize          # Q tile
                + 2 * L * D * qkv_itemsize     # K, V tiles
                + 2 * tq * L * 4               # A, D_s tiles (f32)
                + L * 4                        # mask row
                + tq * D * 4                   # out tile (f32)
                + tq * L * attn_itemsize)      # attn-weight tile
    need = 2 * per_step + (8 << 20)            # double-buffered + compiler scratch headroom
    return int(min(max(need, 32 << 20), 64 << 20))   # stay within v7x physical VMEM


def msrsa(Q, K, V, attention_mask, adjacency, distance, weight_A, weight_D,
          *, matmul_dtype=jnp.bfloat16, attn_weight_dtype=jnp.float32):
    """Q,K,V: (b,h,l,d). attention_mask: (b,l). adjacency/distance: (b,l,l).
    weight_A/weight_D: (h,). Returns {out: (b,h,l,d) f32, attn_weight: (b,h,l,l)}."""
    b, h, L, D = Q.shape
    tq = _pick_tq(L)
    nq = L // tq

    # MXU-friendly input dtypes (f32 accumulation happens in-kernel).
    Qc = Q.astype(matmul_dtype)
    Kc = K.astype(matmul_dtype)
    Vc = V.astype(matmul_dtype)
    Af = adjacency.astype(jnp.float32)
    Df = distance.astype(jnp.float32)
    # Key mask stays (b, 1, L); broadcast across query rows inside the kernel.
    M = attention_mask.astype(jnp.float32).reshape(b, 1, L)

    q_spec = pl.BlockSpec((1, 1, tq, D), lambda bi, qi, hi, wA, wD: (bi, hi, qi, 0))
    kv_spec = pl.BlockSpec((1, 1, L, D), lambda bi, qi, hi, wA, wD: (bi, hi, 0, 0))
    ad_spec = pl.BlockSpec((1, tq, L), lambda bi, qi, hi, wA, wD: (bi, qi, 0))
    m_spec = pl.BlockSpec((1, 1, L), lambda bi, qi, hi, wA, wD: (bi, 0, 0))
    out_spec = pl.BlockSpec((1, 1, tq, D), lambda bi, qi, hi, wA, wD: (bi, hi, qi, 0))
    attn_spec = pl.BlockSpec((1, 1, tq, L), lambda bi, qi, hi, wA, wD: (bi, hi, qi, 0))

    grid_spec = pltpu.PrefetchScalarGridSpec(
        num_scalar_prefetch=2,
        grid=(b, nq, h),                      # h innermost -> A/D/M tiles reused across heads
        in_specs=[q_spec, kv_spec, kv_spec, ad_spec, ad_spec, m_spec],
        out_specs=[out_spec, attn_spec],
    )

    vmem_limit = _vmem_limit_bytes(
        tq, L, D, jnp.dtype(matmul_dtype).itemsize, jnp.dtype(attn_weight_dtype).itemsize)

    out, attn_w = pl.pallas_call(
        _msrsa_kernel,
        out_shape=(
            jax.ShapeDtypeStruct((b, h, L, D), jnp.float32),
            jax.ShapeDtypeStruct((b, h, L, L), attn_weight_dtype),
        ),
        grid_spec=grid_spec,
        compiler_params=pltpu.CompilerParams(
            # batch / q-tile parallel, heads sequential: on v7x the two TCs split
            # along b (and q), preserving the A/D/M block reuse across h per core.
            dimension_semantics=("parallel", "parallel", "arbitrary"),
            vmem_limit_bytes=vmem_limit),
    )(weight_A.astype(jnp.float32), weight_D.astype(jnp.float32),
      Qc, Kc, Vc, Af, Df, M)

    # TODO(synk): for small D a lane-dense (b, L, h*D) output layout would avoid
    # masked partial stores; left as wrapper-side plumbing.
    return {"out": out, "attn_weight": attn_w}


def msrsa_reference(Q, K, V, attention_mask, adjacency, distance, wA, wD,
                    matmul_dtype=jnp.bfloat16):
    """Pure-JAX reference with the SAME precision strategy as the kernel
    (bf16 matmul inputs, f32 accumulation, f32 softmax)."""
    b, h, L, D = Q.shape
    s = jnp.einsum("bhld,bhmd->bhlm",
                   Q.astype(matmul_dtype), K.astype(matmul_dtype),
                   preferred_element_type=jnp.float32)
    M = attention_mask[:, None, None, :].astype(jnp.float32)
    s = jnp.where(M != 0.0, s, 0.0)
    bias = (1.0
            + adjacency[:, None] * wA.reshape(1, h, 1, 1)
            + distance[:, None] * wD.reshape(1, h, 1, 1)) / jnp.sqrt(jnp.float32(D))
    s = s * bias
    w = jax.nn.softmax(s, axis=-1)
    out = jnp.einsum("bhlm,bhmd->bhld",
                     w.astype(matmul_dtype), V.astype(matmul_dtype),
                     preferred_element_type=jnp.float32)
    return out, w


if __name__ == "__main__":
    b, h, L, D = 2, 2, 8, 32
    key = jax.random.PRNGKey(0)
    k1, k2, k3, k4, k5, k6, k7 = jax.random.split(key, 7)

    Q = jax.random.normal(k1, (b, h, L, D), dtype=jnp.float32)
    K = jax.random.normal(k2, (b, h, L, D), dtype=jnp.float32)
    V = jax.random.normal(k3, (b, h, L, D), dtype=jnp.float32)

    # adjacency: 0/1 matrix; distance: row-subtracted distances (non-positive)
    adjacency = (jax.random.uniform(k4, (b, L, L)) > 0.5).astype(jnp.float32)
    dist = jax.random.uniform(k5, (b, L, L), dtype=jnp.float32) * 5.0
    distance = dist - jnp.max(dist, axis=-1, keepdims=True)

    # key mask: (b, l); last two keys of batch 1 invalid
    attention_mask = jnp.ones((b, L), dtype=jnp.float32)
    attention_mask = attention_mask.at[1, -2:].set(0.0)

    # deterministic "randn" parameters of shape (num_heads,)
    weight_A = jax.random.normal(k6, (h,), dtype=jnp.float32)
    weight_D = jax.random.normal(k7, (h,), dtype=jnp.float32)

    result = msrsa(Q, K, V, attention_mask, adjacency, distance, weight_A, weight_D)
    jax.block_until_ready(result)

    ref_out, ref_w = msrsa_reference(Q, K, V, attention_mask, adjacency, distance,
                                     weight_A, weight_D)
    np.testing.assert_allclose(np.asarray(result["out"]), np.asarray(ref_out),
                               atol=1e-4, rtol=1e-4)
    np.testing.assert_allclose(np.asarray(result["attn_weight"]), np.asarray(ref_w),
                               atol=1e-4, rtol=1e-4)

    print("KERNEL_OK")
</pallas_src>

<mosaic_0001>
module attributes {stable_mosaic.version = 11 : i64} {
  func.func @_msrsa_kernel(%arg0: i32, %arg1: i32, %arg2: i32, %arg3: memref<2xf32, #tpu.memory_space<smem>>, %arg4: memref<2xf32, #tpu.memory_space<smem>>, %arg5: memref<1x1x8x32xbf16, #tpu.memory_space<vmem>>, %arg6: memref<1x1x8x32xbf16, #tpu.memory_space<vmem>>, %arg7: memref<1x1x8x32xbf16, #tpu.memory_space<vmem>>, %arg8: memref<1x8x8xf32, #tpu.memory_space<vmem>>, %arg9: memref<1x8x8xf32, #tpu.memory_space<vmem>>, %arg10: memref<1x1x8xf32, #tpu.memory_space<vmem>>, %arg11: memref<1x1x8x32xf32, #tpu.memory_space<vmem>>, %arg12: memref<1x1x8x8xf32, #tpu.memory_space<vmem>>) attributes {dimension_semantics = [#tpu.dimension_semantics<parallel>, #tpu.dimension_semantics<parallel>, #tpu.dimension_semantics<arbitrary>], iteration_bounds = array<i64: 2, 1, 2>, scalar_prefetch = 2 : i64, scratch_operands = 0 : i64, tpu.core_type = #tpu.core_type<tc>, window_params = [{transform_indices = @transform_0, window_bounds = array<i64: 1, 1, 8, 32>}, {transform_indices = @transform_1, window_bounds = array<i64: 1, 1, 8, 32>}, {transform_indices = @transform_2, window_bounds = array<i64: 1, 1, 8, 32>}, {transform_indices = @transform_3, window_bounds = array<i64: 1, 8, 8>}, {transform_indices = @transform_4, window_bounds = array<i64: 1, 8, 8>}, {transform_indices = @transform_5, window_bounds = array<i64: 1, 1, 8>}, {transform_indices = @transform_6, window_bounds = array<i64: 1, 1, 8, 32>}, {transform_indices = @transform_7, window_bounds = array<i64: 1, 1, 8, 8>}]} {
    %c0 = arith.constant 0 : index
    %c0_0 = arith.constant 0 : index
    %c0_1 = arith.constant 0 : index
    %c0_2 = arith.constant 0 : index
    %0 = vector.load %arg5[%c0, %c0_0, %c0_1, %c0_2] : memref<1x1x8x32xbf16, #tpu.memory_space<vmem>>, vector<1x1x8x32xbf16>
    %1 = vector.shape_cast %0 : vector<1x1x8x32xbf16> to vector<8x32xbf16>
    %c0_3 = arith.constant 0 : index
    %c0_4 = arith.constant 0 : index
    %c0_5 = arith.constant 0 : index
    %c0_6 = arith.constant 0 : index
    %2 = vector.load %arg6[%c0_3, %c0_4, %c0_5, %c0_6] : memref<1x1x8x32xbf16, #tpu.memory_space<vmem>>, vector<1x1x8x32xbf16>
    %3 = vector.shape_cast %2 : vector<1x1x8x32xbf16> to vector<8x32xbf16>
    %c0_7 = arith.constant 0 : index
    %c0_8 = arith.constant 0 : index
    %c0_9 = arith.constant 0 : index
    %c0_10 = arith.constant 0 : index
    %4 = vector.load %arg7[%c0_7, %c0_8, %c0_9, %c0_10] : memref<1x1x8x32xbf16, #tpu.memory_space<vmem>>, vector<1x1x8x32xbf16>
    %5 = vector.shape_cast %4 : vector<1x1x8x32xbf16> to vector<8x32xbf16>
    %c0_11 = arith.constant 0 : index
    %c0_12 = arith.constant 0 : index
    %c0_13 = arith.constant 0 : index
    %6 = vector.load %arg8[%c0_11, %c0_12, %c0_13] : memref<1x8x8xf32, #tpu.memory_space<vmem>>, vector<1x8x8xf32>
    %7 = vector.shape_cast %6 : vector<1x8x8xf32> to vector<8x8xf32>
    %c0_14 = arith.constant 0 : index
    %c0_15 = arith.constant 0 : index
    %c0_16 = arith.constant 0 : index
    %8 = vector.load %arg9[%c0_14, %c0_15, %c0_16] : memref<1x8x8xf32, #tpu.memory_space<vmem>>, vector<1x8x8xf32>
    %9 = vector.shape_cast %8 : vector<1x8x8xf32> to vector<8x8xf32>
    %c0_17 = arith.constant 0 : index
    %c0_18 = arith.constant 0 : index
    %c0_19 = arith.constant 0 : index
    %10 = vector.load %arg10[%c0_17, %c0_18, %c0_19] : memref<1x1x8xf32, #tpu.memory_space<vmem>>, vector<1x1x8xf32>
    %11 = vector.shape_cast %10 : vector<1x1x8xf32> to vector<1x8xf32>
    %cst = arith.constant dense<0.000000e+00> : vector<8x8xf32>
    %12 = tpu.matmul %1, %3, %cst {dimension_numbers = #tpu.dot_dimension_numbers<[1], [1], [0], [0], [0, 0, 1, 0], [], []>} : vector<8x32xbf16>, vector<8x32xbf16>, vector<8x8xf32> -> vector<8x8xf32>
    %cst_20 = arith.constant 0.000000e+00 : f32
    %13 = vector.broadcast %cst_20 : f32 to vector<1x8xf32>
    %14 = arith.cmpf one, %11, %13 : vector<1x8xf32>
    %cst_21 = arith.constant 0.000000e+00 : f32
    %15 = vector.shape_cast %14 : vector<1x8xi1> to vector<1x8xi1>
    %16 = vector.broadcast %15 : vector<1x8xi1> to vector<8x8xi1>
    %17 = vector.broadcast %cst_21 : f32 to vector<8x8xf32>
    %18 = arith.select %16, %12, %17 : vector<8x8xi1>, vector<8x8xf32>
    %19 = arith.index_cast %arg2 : i32 to index
    %20 = memref.load %arg3[%19] : memref<2xf32, #tpu.memory_space<smem>>
    %21 = arith.index_cast %arg2 : i32 to index
    %22 = memref.load %arg4[%21] : memref<2xf32, #tpu.memory_space<smem>>
    %23 = vector.broadcast %20 : f32 to vector<8x8xf32>
    %24 = arith.mulf %7, %23 : vector<8x8xf32>
    %cst_22 = arith.constant 1.000000e+00 : f32
    %25 = vector.broadcast %cst_22 : f32 to vector<8x8xf32>
    %26 = arith.addf %25, %24 : vector<8x8xf32>
    %27 = vector.broadcast %22 : f32 to vector<8x8xf32>
    %28 = arith.mulf %9, %27 : vector<8x8xf32>
    %29 = arith.addf %26, %28 : vector<8x8xf32>
    %cst_23 = arith.constant 0.176776692 : f32
    %30 = vector.broadcast %cst_23 : f32 to vector<8x8xf32>
    %31 = arith.mulf %29, %30 : vector<8x8xf32>
    %32 = arith.mulf %18, %31 : vector<8x8xf32>
    %cst_24 = arith.constant dense<0xFF800000> : vector<8xf32>
    %33 = vector.multi_reduction <maximumf>, %32, %cst_24 [1] : vector<8x8xf32> to vector<8xf32>
    %34 = vector.shape_cast %33 : vector<8xf32> to vector<8x1xf32>
    %35 = vector.broadcast %34 : vector<8x1xf32> to vector<8x8xf32>
    %36 = arith.subf %32, %35 : vector<8x8xf32>
    %37 = math.exp %36 : vector<8x8xf32>
    %cst_25 = arith.constant dense<0.000000e+00> : vector<8xf32>
    %38 = vector.multi_reduction <add>, %37, %cst_25 [1] : vector<8x8xf32> to vector<8xf32>
    %39 = vector.shape_cast %38 : vector<8xf32> to vector<8x1xf32>
    %40 = tpu.reciprocal %39 : vector<8x1xf32> -> vector<8x1xf32>
    %41 = vector.broadcast %40 : vector<8x1xf32> to vector<8x8xf32>
    %42 = arith.mulf %37, %41 : vector<8x8xf32>
    %43 = arith.truncf %42 : vector<8x8xf32> to vector<8x8xbf16>
    %cst_26 = arith.constant dense<0.000000e+00> : vector<8x32xf32>
    %44 = tpu.matmul %43, %5, %cst_26 {dimension_numbers = #tpu.dot_dimension_numbers<[1], [0], [0], [1], [0, 0, 1, 1], [], []>} : vector<8x8xbf16>, vector<8x32xbf16>, vector<8x32xf32> -> vector<8x32xf32>
    %c0_27 = arith.constant 0 : index
    %c0_28 = arith.constant 0 : index
    %c0_29 = arith.constant 0 : index
    %c0_30 = arith.constant 0 : index
    %45 = vector.load %arg11[%c0_27, %c0_28, %c0_29, %c0_30] : memref<1x1x8x32xf32, #tpu.memory_space<vmem>>, vector<1x1x8x32xf32>
    %46 = vector.shape_cast %45 : vector<1x1x8x32xf32> to vector<8x32xf32>
    %47 = vector.shape_cast %44 : vector<8x32xf32> to vector<1x1x8x32xf32>
    tpu.vector_store %arg11[%c0_27, %c0_28, %c0_29, %c0_30], %47 {strides = array<i32>} : memref<1x1x8x32xf32, #tpu.memory_space<vmem>>, vector<1x1x8x32xf32>,
    %c0_31 = arith.constant 0 : index
    %c0_32 = arith.constant 0 : index
    %c0_33 = arith.constant 0 : index
    %c0_34 = arith.constant 0 : index
    %48 = vector.load %arg12[%c0_31, %c0_32, %c0_33, %c0_34] : memref<1x1x8x8xf32, #tpu.memory_space<vmem>>, vector<1x1x8x8xf32>
    %49 = vector.shape_cast %48 : vector<1x1x8x8xf32> to vector<8x8xf32>
    %50 = vector.shape_cast %42 : vector<8x8xf32> to vector<1x1x8x8xf32>
    tpu.vector_store %arg12[%c0_31, %c0_32, %c0_33, %c0_34], %50 {strides = array<i32>} : memref<1x1x8x8xf32, #tpu.memory_space<vmem>>, vector<1x1x8x8xf32>,
    return
  }
  func.func @transform_0(%arg0: i32, %arg1: i32, %arg2: i32, %arg3: memref<2xf32, #tpu.memory_space<smem>>, %arg4: memref<2xf32, #tpu.memory_space<smem>>) -> (i32, i32, i32, i32) {
    %c0_i32 = arith.constant 0 : i32
    %c0_i32_0 = arith.constant 0 : i32
    return %arg0, %arg2, %arg1, %c0_i32 : i32, i32, i32, i32
  }
  func.func @transform_1(%arg0: i32, %arg1: i32, %arg2: i32, %arg3: memref<2xf32, #tpu.memory_space<smem>>, %arg4: memref<2xf32, #tpu.memory_space<smem>>) -> (i32, i32, i32, i32) {
    %c0_i32 = arith.constant 0 : i32
    %c0_i32_0 = arith.constant 0 : i32
    %c0_i32_1 = arith.constant 0 : i32
    return %arg0, %arg2, %c0_i32, %c0_i32_0 : i32, i32, i32, i32
  }
  func.func @transform_2(%arg0: i32, %arg1: i32, %arg2: i32, %arg3: memref<2xf32, #tpu.memory_space<smem>>, %arg4: memref<2xf32, #tpu.memory_space<smem>>) -> (i32, i32, i32, i32) {
    %c0_i32 = arith.constant 0 : i32
    %c0_i32_0 = arith.constant 0 : i32
    %c0_i32_1 = arith.constant 0 : i32
    return %arg0, %arg2, %c0_i32, %c0_i32_0 : i32, i32, i32, i32
  }
  func.func @transform_3(%arg0: i32, %arg1: i32, %arg2: i32, %arg3: memref<2xf32, #tpu.memory_space<smem>>, %arg4: memref<2xf32, #tpu.memory_space<smem>>) -> (i32, i32, i32) {
    %c0_i32 = arith.constant 0 : i32
    %c0_i32_0 = arith.constant 0 : i32
    return %arg0, %arg1, %c0_i32 : i32, i32, i32
  }
  func.func @transform_4(%arg0: i32, %arg1: i32, %arg2: i32, %arg3: memref<2xf32, #tpu.memory_space<smem>>, %arg4: memref<2xf32, #tpu.memory_space<smem>>) -> (i32, i32, i32) {
    %c0_i32 = arith.constant 0 : i32
    %c0_i32_0 = arith.constant 0 : i32
    return %arg0, %arg1, %c0_i32 : i32, i32, i32
  }
  func.func @transform_5(%arg0: i32, %arg1: i32, %arg2: i32, %arg3: memref<2xf32, #tpu.memory_space<smem>>, %arg4: memref<2xf32, #tpu.memory_space<smem>>) -> (i32, i32, i32) {
    %c0_i32 = arith.constant 0 : i32
    %c0_i32_0 = arith.constant 0 : i32
    %c0_i32_1 = arith.constant 0 : i32
    return %arg0, %c0_i32, %c0_i32_0 : i32, i32, i32
  }
  func.func @transform_6(%arg0: i32, %arg1: i32, %arg2: i32, %arg3: memref<2xf32, #tpu.memory_space<smem>>, %arg4: memref<2xf32, #tpu.memory_space<smem>>) -> (i32, i32, i32, i32) {
    %c0_i32 = arith.constant 0 : i32
    %c0_i32_0 = arith.constant 0 : i32
    return %arg0, %arg2, %arg1, %c0_i32 : i32, i32, i32, i32
  }
  func.func @transform_7(%arg0: i32, %arg1: i32, %arg2: i32, %arg3: memref<2xf32, #tpu.memory_space<smem>>, %arg4: memref<2xf32, #tpu.memory_space<smem>>) -> (i32, i32, i32, i32) {
    %c0_i32 = arith.constant 0 : i32
    %c0_i32_0 = arith.constant 0 : i32
    return %arg0, %arg2, %arg1, %c0_i32 : i32, i32, i32, i32
  }
}

</mosaic_0001>

<bundles_post_ra>
// kernel: tpu_custom_call.1
= control target key start
LH: loop header
LB: loop body
LE: loop exit
PB: predicated region body
PF: predicated region fallthrough
CT: control target
= control target key end

     0   :  { %s1426_s30 = smov [#allocation3]   ;;  %s1875_s0 = inlined_call_operand.hbm [shape: f32[2], index: 0, kind: input, shape index: {}]   ;;  %s1876_s2 = inlined_call_operand.hbm [shape: bf16[2,2,8,32], index: 2, kind: input, shape index: {}]   ;;  %s1877_s3 = inlined_call_operand.hbm [shape: bf16[2,2,8,32], index: 3, kind: input, shape index: {}]   ;;  %s1878_s4 = inlined_call_operand.hbm [shape: bf16[2,2,8,32], index: 4, kind: input, shape index: {}]   ;;  %s1879_s5 = inlined_call_operand.hbm [shape: f32[2,8,8], index: 5, kind: input, shape index: {}]   ;;  %s1880_s6 = inlined_call_operand.hbm [shape: f32[2,8,8], index: 6, kind: input, shape index: {}]   ;;  %s1881_s7 = inlined_call_operand.vmem [shape: f32[2,1,8], index: 7, kind: input, shape index: {}]   ;;  %s1882_s8 = inlined_call_operand.hbm [shape: f32[2,2,8,32], index: 8, kind: output, shape index: {0}]   ;;  %s1883_s9 = inlined_call_operand.hbm [shape: f32[2,2,8,8], index: 9, kind: output, shape index: {1}]   ;;  %s1884_s1 = inlined_call_operand.vmem [shape: f32[2], index: 1, kind: input, shape index: {}]  }
   0x1   :  { %1906 = sst [smem:[#allocation35_spill]] %s1877_s3  ;;  %s17_s14 = sshll.u32 %s1884_s1, 4  ;;  %s18_s14 = int_to_ptr.vmem [resolvable:$true] %s17_s14 }
   0x2   :  { %1907 = sst [smem:[#allocation36_spill]] %s1879_s5  ;;  %s1112_s15 = scalar_lea.vmem %s18_s14, 16 }
   0x3   :  { %1908 = sst [smem:[#allocation37_spill]] %s1880_s6  ;;  %p1113_p0 = scmp.ne.s32.totalorder %s18_s14, %s1112_s15 }
   0x4   :  { %1909 = sst [smem:[#allocation38_spill]] %s1881_s7  ;;  %p1117_p1 = scmp.lt.s32.totalorder %s18_s14, %s18_s14 }
   0x5   :  { %1910 = sst [smem:[#allocation39_spill]] %s1882_s8  ;;  %p1118_p2 = scmp.lt.s32.totalorder %s1112_s15, %s1112_s15 }
   0x6   :  { %1911 = sst [smem:[#allocation40_spill]] %s1883_s9 }
   0x7   :  { %16 = dma.hbm_to_smem %s1875_s0, 16, %s1426_s30, [#allocation2] }
   0x8   :  { %p1119_p3 = por %p1118_p2, %p1117_p1 }
   0xa   :  { %p1120_p4 = pnand %p1119_p3, %p1113_p0 }
   0xc   :  { %1123 = shalt.err (!%p1120_p4)  }
   0xd   :  { %s1427_s16 = smov [#allocation4]  }
   0xe   :  { %20 = dma.vmem_to_smem %s18_s14, 16, %s1427_s16, [#allocation2] }
   0xf   :  { %1360 = dma.done.wait [#allocation2], 32 }
  0x10   :  { %1361 = vsyncadd [#allocation2], 4294967264 }
  0x11   :  { %22 = sfence }
  0x12   :  { %23 = vsyncpa [#allocation6], 0 }
  0x13   :  { %25 = vsyncpa [#allocation6 + $0x1], 0 }
  0x14   :  { %26 = vsyncpa [#allocation9], 0 }
  0x15   :  { %28 = vsyncpa [#allocation9 + $0x1], 0 }
  0x16   :  { %29 = vsyncpa [#allocation12], 0 }
  0x17   :  { %31 = vsyncpa [#allocation12 + $0x1], 0 }
  0x18   :  { %32 = vsyncpa [#allocation7], 0 }
  0x19   :  { %34 = vsyncpa [#allocation7 + $0x1], 0 }
  0x1a   :  { %35 = vsyncpa [#allocation16], 0 }
  0x1b   :  { %37 = vsyncpa [#allocation16 + $0x1], 0  ;;  %s1494_s0 = smov 0   ;;  %s1496_s1 = smov 0  }
  0x1c   :  { %s1498_s17 = smov 0   ;;  %s1500_s18 = smov 0  }
  0x1d   :  { %s1502_s19 = smov 0   ;;  %s1504_s20 = smov 0  }
  0x1e   :  { %s1506_s21 = smov 0   ;;  %s1508_s22 = smov 0  }
  0x1f   :  { %s1510_s23 = smov 0   ;;  %s1512_s24 = smov 0  }
  0x20   :  { %s1514_s25 = smov 0  }
  0x21 LB: > { %1912 = sst [smem:[#allocation23_spill]] %s1392_s17  ;;  %s1550_s26 = sadd.s32 4294967295, %s1424_s25   ;;  %s1424_s25 = sphi %s1514_s25, %s43_s25   ;;  %s1420_s24 = sphi %s1512_s24, %s1959_s24   ;;  %s1416_s23 = sphi %s1510_s23, %s1958_s23   ;;  %s1412_s22 = sphi %s1508_s22, %s1957_s22   ;;  %s1408_s21 = sphi %s1506_s21, %s1956_s21   ;;  %s1404_s20 = sphi %s1504_s20, %s1964_s20   ;;  %s1400_s19 = sphi %s1502_s19, %s1963_s19   ;;  %s1396_s18 = sphi %s1500_s18, %s1962_s18   ;;  %s1392_s17 = sphi %s1498_s17, %s1954_s17   ;;  %s1388_s1 = sphi %s1496_s1, %s1961_s1   ;;  %s1384_s0 = sphi %s1494_s0, %s1960_s0  }
  0x22   : > { %1913 = sst [smem:[#allocation24_spill]] %s1396_s18  ;;  %s918_s27 = sadd.s32 4294967294, %s1424_s25  }
  0x23   : > { %1914 = sst [smem:[#allocation25_spill]] %s1408_s21  ;;  %s55_s28 = sadd.s32 1, %s1416_s23 }
  0x24   : > { %1915 = sst [smem:[#allocation26_spill]] %s1416_s23  ;;  %s62_s29 = sadd.s32 1, %s1420_s24 }
  0x25   : > { %1916 = sst [smem:[#allocation27_spill]] %s1420_s24  ;;  %p56_p5 = scmp.ge.s32.totalorder %s55_s28, 2 }
  0x26   : > { %1917 = sst [smem:[#allocation28_spill]] %s1424_s25  ;;  %s73_s30 = sadd.s32 1, %s1404_s20 }
  0x27   : > { %p80_p6 = scmp.ne.s32.totalorder %s1404_s20, %s1400_s19  ;;  %p1897_p7 = scmp.eq.s32.totalorder %s1424_s25, 0 }
  0x28   : > { %s1966_s28 = smov (%p56_p5, %s55_s28), 0  ;;  %s1968_s29 = smov (!%p56_p5, %s62_s29), %s1420_s24 }
  0x29   : > { %1918 = sst [smem:[#allocation29_spill]] %s1966_s28  ;;  %s67_s10 = ssub.s32 %s1416_s23, %s1966_s28 }
  0x2a   : > { %p1566_p8 = por %p1897_p7, %p80_p6  ;;  %p64_p9 = scmp.ge.s32.totalorder %s1968_s29, 2 }
  0x2b   : > { %p86_p10 = scmp.ne.s32.totalorder %s1400_s19, %s1396_s18  ;;  %p1896_p11 = scmp.eq.s32.totalorder %s1550_s26, 0 }
  0x2c   : > { %p252_p12 = scmp.eq.s32.totalorder %s1550_s26, 3  ;;  %s1970_s29 = smov (%p64_p9, %s1968_s29), 0 }
  0x2d   : > { %1920 = sst [smem:[#allocation30_spill]] %s1970_s29  ;;  %p1578_p13 = por %p1896_p11, %p86_p10 }
  0x2e   : > { %p1582_p0 = por %p252_p12, %p80_p6  ;;  %s1588_s14 = ssub.s32 %s1420_s24, %s1970_s29 }
  0x2f   : > { %p258_p1 = scmp.eq.s32.totalorder %s918_s27, 3  ;;  %s68_s15 = sor.u32 %s67_s10, %s1588_s14 }
  0x30   : > { %s1922_s13 = scalar_select %p1582_p0, 1, 0 }
  0x31   : > { %p155_p2 = scmp.eq.s32.totalorder %s1588_s14, 0  ;;  %p71_p3 = scmp.eq.s32.totalorder %s68_s15, 0 }
  0x32   : > { %1923 = sst [smem:[#allocation31_spill]] %s1922_s13  ;;  %p1592_p4 = por %p258_p1, %p86_p10 }
  0x33   : > { %p1895_p5 = scmp.lt.s32.totalorder %s1424_s25, 4  ;;  %s1891_s18 = sand.u32 1, %s1404_s20  }
  0x34   : > { %s1924_s16 = scalar_select %p1592_p4, 1, 0 }
  0x35   : > { %s1598_s28 = scalar_select %p71_p3, %s1404_s20, %s73_s30  }
  0x36   : > { %1925 = sst [smem:[#allocation32_spill]] %s1924_s16  ;;  %s922_s8 = sshll.u32 %s1420_s24, 1 }
  0x37   : > { %1926 = sst [smem:[#allocation33_spill]] %s1598_s28  ;;  %s1604_s29 = sshll.u32 %s1891_s18, 2 }
  0x38   : > { %s318_s9 = sadd.s32 %s1416_s23, %s922_s8  ;;  %p1613_p6 = pnand %p1895_p5, %p1566_p8 }
  0x39   : > { %s1607_s27 = sshll.u32 %s318_s9, 6  ;;  %s1899_s30 = sand.u32 1, %s1424_s25  }
  0x3a   : > { %s1928_s3 = sld [smem:[#allocation35_spill]]  ;;  %s333_s18 = scalar_lea.vmem [#allocation8], %s1604_s29 }
  0x3b   : > { %s342_s13 = sshll.u32 %s333_s18, 4  ;;  %p934_p9 = scmp.ge.s32.totalorder %s1424_s25, 1  ;;  %s343_s13 = int_to_ptr.vmem [resolvable:$true] %s342_s13 }
  0x3c   : > { %s1626_s8 = scalar_lea.sflag [#allocation9], %s1899_s30  ;;  %p1898_p10 = pneg %p1613_p6 }
  0x3d   : > { %s1137_s9 = scalar_lea.vmem %s343_s13, 64  ;;  %s1428_s11 = smov [#allocation8]  }
  0x3e   : > { %p1138_p8 = scmp.ne.s32.totalorder %s343_s13, %s1137_s9  ;;  %s1142_s23 = sshll.u32 %s1428_s11, 4  ;;  %s1143_s23 = int_to_ptr.vmem [resolvable:$false] %s1142_s23 }
  0x3f   : > { %s1144_s28 = scalar_lea.vmem %s1143_s23, 128  ;;  %p1145_p3 = scmp.lt.s32.totalorder %s343_s13, %s1143_s23 }
  0x40   : > { %s340_s16 = scalar_lea.hbm %s1928_s3, %s1607_s27  ;;  %p1140_p12 = pnand %p1138_p8, %p1898_p10 }
  0x41   : > { %p1146_p5 = scmp.lt.s32.totalorder %s1144_s28, %s1137_s9 }
  0x42   : > { %p1141_p1 = pneg %p1140_p12 }
  0x43   : > { %p1147_p11 = por %p1146_p5, %p1145_p3 }
  0x45   : > { %p1148_p7 = pnand %p1147_p11, %p1141_p1 }
  0x47   : > { %1151 = shalt.err (!%p1148_p7)
}
  0x48   : > { %988 = dma.hbm_to_vmem [thread:$0]  (!%p1613_p6), %s340_s16, 64, %s343_s13, %s1626_s8  }
  0x49   : > { %p411_p11 = scmp.lt.s32.totalorder %s1424_s25, 5  ;;  %s157_s23 = sadd.s32 1, %s1392_s17 }
  0x4a   : > { %p164_p5 = scmp.ne.s32.totalorder %s1392_s17, %s1388_s1  ;;  %p1931_p8 = scmp.eq.s32.totalorder %s1424_s25, 0 }
  0x4b   : > { %p1639_p7 = pnand %p934_p9, %p411_p11  ;;  %p170_p1 = scmp.ne.s32.totalorder %s1388_s1, %s1384_s0 }
  0x4c   : > { %s1649_s15 = scalar_select %p155_p2, %s1392_s17, %s157_s23  }
  0x4d   : > { %p166_p12 = por %p164_p5, %p1931_p8  ;;  %s371_s9 = sand.u32 1, %s1392_s17  }
  0x4e   : > { %1930 = sst [smem:[#allocation34_spill]] %s1649_s15  ;;  %p1932_p3 = scmp.eq.s32.totalorder %s1550_s26, 0 }
  0x4f   : > { %s1662_s16 = sshll.u32 %s371_s9, 3  ;;  %s931_s11 = sshll.u32 %s1420_s24, 7 }
  0x50   : > { %p1658_p10 = por %p170_p1, %p1932_p3  ;;  %s1934_s5 = sld [smem:[#allocation36_spill]] }
  0x51   : > { %s373_s14 = scalar_lea.vmem [#allocation11], %s1662_s16  ;;  %p1935_p2 = scmp.lt.s32.totalorder %s1424_s25, 4 }
  0x52   : > { %s381_s23 = sshll.u32 %s373_s14, 4  ;;  %s1937_s6 = sld [smem:[#allocation37_spill]]  ;;  %s382_s23 = int_to_ptr.vmem [resolvable:$true] %s381_s23 }
  0x53   : > { %p1671_p9 = pnand %p1935_p2, %p166_p12  ;;  %s1938_s24 = sand.u32 1, %s1424_s25  }
  0x54   : > { %s1682_s7 = scalar_lea.sflag [#allocation12], %s1938_s24  ;;  %s1165_s30 = scalar_lea.vmem %s382_s23, 128 }
  0x55   : > { %p1905_p11 = pneg %p1671_p9  ;;  %p1166_p5 = scmp.ne.s32.totalorder %s382_s23, %s1165_s30 }
  0x56   : > { %s379_s3 = scalar_lea.hbm %s1934_s5, %s931_s11  ;;  %s1429_s28 = smov [#allocation11]  }
  0x57   : > { %p1168_p8 = pnand %p1166_p5, %p1905_p11  ;;  %s1170_s14 = sshll.u32 %s1429_s28, 4  ;;  %s1171_s14 = int_to_ptr.vmem [resolvable:$false] %s1170_s14 }
  0x58   : > { %s1678_s9 = scalar_lea.hbm %s1937_s6, %s931_s11  ;;  %s1172_s5 = scalar_lea.vmem %s1171_s14, 256 }
  0x59   : > { %p1169_p12 = pneg %p1168_p8  ;;  %p1173_p1 = scmp.lt.s32.totalorder %s382_s23, %s1171_s14 }
  0x5a   : > { %p1174_p3 = scmp.lt.s32.totalorder %s1172_s5, %s1165_s30 }
  0x5c   : > { %p1175_p2 = por %p1174_p3, %p1173_p1 }
  0x5e   : > { %p1176_p4 = pnand %p1175_p2, %p1169_p12 }
  0x60   : > { %1179 = shalt.err (!%p1176_p4)
}
  0x61   : > { %994 = dma.hbm_to_vmem [thread:$0]  (!%p1671_p9), %s379_s3, 128, %s382_s23, %s1682_s7  }
  0x62   : > { %s320_s15 = scalar_lea.hbm %s1876_s2, %s1607_s27  ;;  %s312_s11 = scalar_lea.vmem [#allocation5], %s1604_s29 }
  0x63   : > { %s322_s28 = sshll.u32 %s312_s11, 4  ;;  %s360_s14 = scalar_lea.hbm %s1878_s4, %s1607_s27  ;;  %s323_s28 = int_to_ptr.vmem [resolvable:$true] %s322_s28 }
  0x64   : > { %s1939_s6 = sand.u32 1, %s1404_s20   ;;  %s1193_s21 = scalar_lea.vmem %s323_s28, 64 }
  0x65   : > { %s309_s25 = scalar_lea.sflag [#allocation6], %s1939_s6  ;;  %p1194_p4 = scmp.ne.s32.totalorder %s323_s28, %s1193_s21 }
  0x66   : > { %p1940_p5 = pneg %p1613_p6  ;;  %s1430_s3 = smov [#allocation5]  }
  0x67   : > { %s1198_s23 = sshll.u32 %s1430_s3, 4  ;;  %s1199_s23 = int_to_ptr.vmem [resolvable:$false] %s1198_s23 }
  0x68   : > { %p1196_p8 = pnand %p1194_p4, %p1940_p5  ;;  %s1200_s17 = scalar_lea.vmem %s1199_s23, 128 }
  0x69   : > { %p1201_p1 = scmp.lt.s32.totalorder %s323_s28, %s1199_s23  ;;  %p1202_p3 = scmp.lt.s32.totalorder %s1200_s17, %s1193_s21 }
  0x6a   : > { %p1197_p12 = pneg %p1196_p8 }
  0x6b   : > { %p1203_p2 = por %p1202_p3, %p1201_p1 }
  0x6d   : > { %p1204_p11 = pnand %p1203_p2, %p1197_p12 }
  0x6f   : > { %1207 = shalt.err (!%p1204_p11)
}
  0x70   : > { %985 = dma.hbm_to_vmem [thread:$0]  (!%p1613_p6), %s320_s15, 64, %s323_s28, %s309_s25  }
  0x71   : > { %s353_s6 = scalar_lea.vmem [#allocation10], %s1604_s29  ;;  %s392_s11 = scalar_lea.vmem [#allocation13], %s1662_s16 }
  0x72   : > { %s362_s24 = sshll.u32 %s353_s6, 4  ;;  %s400_s5 = sshll.u32 %s392_s11, 4  ;;  %s363_s24 = int_to_ptr.vmem [resolvable:$true] %s362_s24  ;;  %s1710_s5 = int_to_ptr.vmem [resolvable:$true] %s400_s5 }
  0x73   : > { %s1221_s30 = scalar_lea.vmem %s363_s24, 64  ;;  %s1431_s21 = smov [#allocation10]  }
  0x74   : > { %p1222_p4 = scmp.ne.s32.totalorder %s363_s24, %s1221_s30  ;;  %s1226_s3 = sshll.u32 %s1431_s21, 4  ;;  %s1227_s3 = int_to_ptr.vmem [resolvable:$false] %s1226_s3 }
  0x75   : > { %s1228_s23 = scalar_lea.vmem %s1227_s3, 128  ;;  %p1229_p11 = scmp.lt.s32.totalorder %s363_s24, %s1227_s3 }
  0x76   : > { %p1224_p8 = pnand %p1222_p4, %p1940_p5  ;;  %p1230_p1 = scmp.lt.s32.totalorder %s1228_s23, %s1221_s30 }
  0x78   : > { %p1225_p12 = pneg %p1224_p8  ;;  %p1231_p3 = por %p1230_p1, %p1229_p11 }
  0x7a   : > { %p1232_p2 = pnand %p1231_p3, %p1225_p12 }
  0x7c   : > { %1235 = shalt.err (!%p1232_p2)
}
  0x7d   : > { %991 = dma.hbm_to_vmem [thread:$0]  (!%p1613_p6), %s360_s14, 64, %s363_s24, %s1626_s8  }
  0x7e   : > { %s1249_s16 = scalar_lea.vmem %s1710_s5, 128  ;;  %p1941_p5 = pneg %p1671_p9 }
  0x7f   : > { %p1250_p4 = scmp.ne.s32.totalorder %s1710_s5, %s1249_s16  ;;  %s1432_s15 = smov [#allocation13]  }
  0x80   : > { %s1254_s28 = sshll.u32 %s1432_s15, 4  ;;  %s1255_s28 = int_to_ptr.vmem [resolvable:$false] %s1254_s28 }
  0x81   : > { %p1252_p8 = pnand %p1250_p4, %p1941_p5  ;;  %s1256_s10 = scalar_lea.vmem %s1255_s28, 256 }
  0x82   : > { %p1257_p11 = scmp.lt.s32.totalorder %s1710_s5, %s1255_s28  ;;  %p1258_p1 = scmp.lt.s32.totalorder %s1256_s10, %s1249_s16 }
  0x83   : > { %p1253_p12 = pneg %p1252_p8 }
  0x84   : > { %p1259_p3 = por %p1258_p1, %p1257_p11 }
  0x86   : > { %p1260_p2 = pnand %p1259_p3, %p1253_p12 }
  0x88   : > { %1263 = shalt.err (!%p1260_p2)
}
  0x89   : > { %997 = dma.hbm_to_vmem [thread:$0]  (!%p1671_p9), %s1678_s9, 128, %s1710_s5, %s1682_s7  }
  0x8a   : > { %415 = sbr.rel (%p1639_p7) target bundleno = 880 (0x370), region = 44  ;;  %s1737_s27 = sand.u32 (!%p1639_p7), 1, %s1400_s19  }
  0x8b   : > { %s1740_s8 = sshll.u32 (!%p1639_p7), %s1737_s27, 2  ;;  %s418_s14 = scalar_lea.sflag (!%p1639_p7), [#allocation6], %s1737_s27 }
  0x8c   : > { %s421_s17 = scalar_lea.vmem (!%p1639_p7), [#allocation5], %s1740_s8 }
  0x8f   : > { %1363 = dma.done.wait (%p1578_p13), %s418_s14, 64  }
  0x90   : > { %1365 = vsyncadd (%p1578_p13), %s418_s14, 4294967232  ;;  %s426_s7 = sand.u32 1, %s1550_s26   ;;  %s430_s0 = scalar_lea.vmem [#allocation8], %s1740_s8 }
  0x91   : > { %s427_s18 = scalar_lea.sflag [#allocation9], %s426_s7 }
  0x92   : > { %1367 = dma.done.wait (%p1578_p13), %s427_s18, 128  }
  0x93   : > { %1369 = vsyncadd (%p1578_p13), %s427_s18, 4294967168  ;;  %s446_s9 = sand.u32 1, %s1388_s1   ;;  %s439_s24 = scalar_lea.vmem [#allocation10], %s1740_s8 }
  0x94   : > { %s1755_s6 = sshll.u32 %s446_s9, 3  ;;  %s445_s11 = scalar_lea.sflag [#allocation12], %s426_s7 }
  0x95   : > { %s448_s5 = scalar_lea.vmem [#allocation11], %s1755_s6 }
  0x96   : > { %1371 = dma.done.wait (%p1658_p10), %s445_s11, 256  }
  0x97   : > { %1373 = vsyncadd (%p1658_p10), %s445_s11, 4294967040  ;;  %s1942_s26 = sld [smem:[#allocation25_spill]]  ;;  %v1433_v0 = vmov 0.0   ;;  %vm1434_vm0 = vmmov 0   ;;  %vm526_vm1 = vcmask 261120   ;;  %p516_p13 = scmp.lt.s32.totalorder %s1412_s22, 1  ;;  %v575_v4 = vlaneseq }
  0x98   : > { %956 = vmatprep.subr.bf16.mxu0 %v1433_v0  ;;  %958 = vmatprep.mubr.msk.bf16.mxu0 %vm1434_vm0, %v1433_v0  ;;  %v521_v1 = vld [vmem:[%s430_s0] sm:$0xf]  ;;  %v520_v3 = vld [vmem:[%s421_s17] sm:$0xf]  ;;  %s1943_s23 = sld [smem:[#allocation38_spill]]  ;;  %s457_s29 = scalar_lea.vmem [#allocation13], %s1755_s6 }
  0x99   : > { %962 = vmatprep.subr.bf16.mxu1 %v1433_v0  ;;  %964 = vmatprep.mubr.msk.bf16.mxu1 %vm1434_vm0, %v1433_v0  ;;  %v531_v2 = vsel %vm526_vm1, %v521_v1, 0  ;;  %s517_s13 = scalar_select %p516_p13, %s1412_s22, 1  ;;  %v523_v5 = vld [vmem:[%s448_s5] sm:$0xff]  ;;  %v576_v8 = vshrl.u32 %v575_v4, 7  ;;  %v524_v10 = vld [vmem:[%s457_s29] sm:$0xff]  ;;  %v1435_v15 = vmov 0  }
  0x9a   : > { %957 = vmatpush3.bf16.xpose.msra.mxu0 %v531_v2  ;;  %vm591_vm4 = vcmask 64512   ;;  %v522_v32 = vld [vmem:[%s439_s24] sm:$0xf]  ;;  %vm607_vm5 = vcmask 1043456   ;;  %s940_s16 = sshll.u32 %s1737_s27, 3  ;;  %s946_s10 = sshll.u32 %s1412_s22, 1 }
  0x9b   : > { %v577_v12 = vsub.s32 0, %v576_v8  ;;  %v609_v33 = vsel %vm607_vm5, %v522_v32, 0  ;;  %s515_s28 = scalar_lea.vmem [#allocation15], %s940_s16  ;;  %s1945_s18 = sld [smem:[#allocation40_spill]] }
  0x9c   : > { %963 = vmatpush3.bf16.msra.mxu1 %v609_v33  ;;  %s691_s6 = sshll.u32 %s515_s28, 4  ;;  %s659_s24 = scalar_lea.sflag [#allocation16], %s1737_s27  ;;  %s692_s6 = int_to_ptr.vmem [resolvable:$true] %s691_s6 }
  0x9d   : > { %s581_s12 = sld [smem:[#allocation3 + %s1942_s26]]  ;;  %s1784_s8 = sadd.s32 %s1942_s26, %s946_s10 }
  0x9e   : > { %s582_s30 = sld [smem:[#allocation4 + %s1942_s26]]  ;;  %s518_s25 = scalar_lea.vmem %s1943_s23, %s517_s13 }
  0x9f   : > { %v525_v7 = vld [vmem:[%s518_s25] sm:$0x1]  ;;  %s947_s14 = sshll.u32 %s1784_s8, 7  ;;  %s1264_s11 = scalar_lea.vmem %s692_s6, 128 }
  0xa0   : > { %vm573_vm2 = vcmp.ne.f32.partialorder %v525_v7, 0.0  ;;  %p1265_p6 = scmp.ne.s32.totalorder %s692_s6, %s1264_s11  ;;  %s1436_s5 = smov [#allocation15]  }
  0xa1   : > { %959 = vmatmul.mubr.msk.bf16.vlgmr.msra.gmra.mxu0 %vm526_vm1, %v520_v3  ;;  %v574_v16 = vsel %vm573_vm2, 1, %v1435_v15  ;;  %s1946_s9 = smov %s1945_s18  ;;  %s689_s0 = scalar_lea.hbm %s1945_s18, %s947_s14 }
  0xa2   : > { %v578_v17 = vrot.slane %v574_v16, %v577_v12  ;;  %p1266_p10 = pnand %p1265_p6, %p1582_p0  ;;  %s1268_s22 = sshll.u32 %s1436_s5, 4  ;;  %s1269_s22 = int_to_ptr.vmem [resolvable:$false] %s1268_s22 }
  0xa3   : > { %v583_v6 = vstv %s581_s12  ;;  %s1270_s26 = scalar_lea.vmem %s1269_s22, 256  ;;  %p1271_p9 = scmp.lt.s32.totalorder %s692_s6, %s1269_s22 }
  0xa4   : > { %v584_v9 = vmul.f32 %v583_v6, %v523_v5  ;;  %v586_v11 = vstv %s582_s30  ;;  %vm579_vm3 = vcmp.eq.s32.totalorder %v578_v17, 1  ;;  %p1267_p7 = pneg %p1266_p10  ;;  %p1272_p4 = scmp.lt.s32.totalorder %s1270_s26, %s1264_s11 }
  0xa5   : > { %v587_v14 = vmul.f32 %v586_v11, %v524_v10 }
  0xa6   : > { %v585_v13 = vadd.f32 1.0, %v584_v9  ;;  %p1273_p5 = por %p1272_p4, %p1271_p9 }
  0xa8   : > { %v588_v18 = vadd.f32 %v587_v14, %v585_v13  ;;  %p1274_p8 = pnand %p1273_p5, %p1267_p7 }
  0xaa   : > { %v589_v19 = vmul.f32 0.17677669, %v588_v18 }
 0x161   : > { %v567_v20 = vpop.f32.mrf.mxu0 }
 0x162   : > { %v580_v21 = vsel %vm579_vm3, %v567_v20, 0.0 }
 0x163   : > { %v590_v22 = vmul.f32 %v589_v19, %v580_v21  ;;  %v960_v23 = vpop.f32.mrf.mxu0 }
 0x165   : > { %v570_v24 = vpop.f32.mrf.mxu0  ;;  %v592_v25 = vsel %vm591_vm4, %v590_v22, -inf }
 0x166   : > { %593 = vmax.xlane.f32.xlu0 %v592_v25 }
 0x167   : > { %v961_v26 = vpop.f32.mrf.mxu0 }
 0x1ef   : > { %v594_v27 = vpop.xlane.xlu0 %593 }
 0x1f0   : > { %v595_v28 = vsub.f32 %v590_v22, %v594_v27 }
 0x1f2   : > { %v596_v29 = vmul.f32 1.442695, %v595_v28 }
 0x1f4   : > { %1100 = vpow2.f32 %v596_v29 }
 0x201   : > { %v1101_v30 = vpop.eup %1100 }
 0x202   : > { %v598_v31 = vsel %vm591_vm4, %v1101_v30, 0.0 }
 0x203   : > { %599 = vadd.xlane.f32.xlu0 %v598_v31 }
 0x28c   : > { %v600_v34 = vpop.xlane.xlu0 %599 }
 0x28d   : > { %1102 = vrcp.f32 %v600_v34 }
 0x29a   : > { %v1103_v35 = vpop.eup %1102 }
 0x29b   : > { %v602_v36 = vmul.f32 %v1103_v35, %v1101_v30 }
 0x29d   : > { %v603_v37 = vpack.c.bf16 %v602_v36, %v602_v36  ;;  %652 = vst.msk [vmem:[%s515_s28] sm:$0xff] %vm591_vm4, %v602_v36 }
 0x29f   : > { %965 = vmatmul.mubr.msk.bf16.vlgmr.msra.gmra.mxu1 %vm591_vm4, %v603_v37 }
 0x2a0   : > { %1277 = shalt.err (!%p1274_p8)
}
 0x2a1   : > { %s1278_s12 = scalar_lea.hbm %s689_s0, 128  ;;  %s1282_s21 = scalar_lea.hbm %s1946_s9, 512 }
 0x2a2   : > { %p1279_p12 = scmp.ne.s32.totalorder %s689_s0, %s1278_s12  ;;  %p1283_p3 = scmp.lt.s32.totalorder %s689_s0, %s1946_s9 }
 0x2a3   : > { %p1284_p2 = scmp.lt.s32.totalorder %s1282_s21, %s1278_s12 }
 0x2a4   : > { %p1280_p11 = pnand %p1279_p12, %p1582_p0 }
 0x2a5   : > { %p1285_p13 = por %p1284_p2, %p1283_p3 }
 0x2a6   : > { %p1281_p1 = pneg %p1280_p11 }
 0x2a8   : > { %p1286_p6 = pnand %p1285_p13, %p1281_p1 }
 0x2aa   : > { %1289 = shalt.err (!%p1286_p6)
}
 0x2ab   : > { %979 = dma.vmem_to_hbm [thread:$0]  (%p1582_p0), %s692_s6, 128, %s689_s0, %s659_s24  }
 0x2ac   : > { %s508_s25 = scalar_lea.vmem [#allocation14], %s940_s16  ;;  %s1947_s17 = sld [smem:[#allocation39_spill]] }
 0x2ad   : > { %s675_s29 = sshll.u32 %s508_s25, 4  ;;  %s654_s11 = scalar_lea.sflag [#allocation7], %s1737_s27  ;;  %s1814_s29 = int_to_ptr.vmem [resolvable:$true] %s675_s29 }
 0x2ae   : > { %s1290_s0 = scalar_lea.vmem %s1814_s29, 128  ;;  %s1437_s16 = smov [#allocation14]  }
 0x2af   : > { %p1291_p10 = scmp.ne.s32.totalorder %s1814_s29, %s1290_s0  ;;  %s1294_s8 = sshll.u32 %s1437_s16, 4  ;;  %s1295_s8 = int_to_ptr.vmem [resolvable:$false] %s1294_s8 }
 0x2b0   : > { %p1297_p4 = scmp.lt.s32.totalorder %s1814_s29, %s1295_s8 }
 0x2b1   : > { %p1292_p7 = pnand %p1291_p10, %p1582_p0 }
 0x2b2   : > { %s1948_s7 = smov %s1947_s17  ;;  %s1812_s18 = scalar_lea.hbm %s1947_s17, %s947_s14 }
 0x2b3   : > { %p1293_p9 = pneg %p1292_p7  ;;  %s1296_s14 = scalar_lea.vmem %s1295_s8, 256 }
 0x2b4   : > { %p1298_p5 = scmp.lt.s32.totalorder %s1296_s14, %s1290_s0 }
 0x2b6   : > { %p1299_p8 = por %p1298_p5, %p1297_p4 }
 0x2b8   : > { %p1300_p12 = pnand %p1299_p8, %p1293_p9 }
 0x35f   : > { %v645_v38 = vpop.f32.mrf.mxu1 }
 0x360   : > { %651 = vst.msk [vmem:[%s508_s25] sm:$0xff] %vm526_vm1, %v645_v38 }
 0x361   : > { %v966_v39 = vpop.f32.mrf.mxu1 }
 0x362   : > { %1303 = shalt.err (!%p1300_p12)
}
 0x363   : > { %s1304_s6 = scalar_lea.hbm %s1812_s18, 128  ;;  %s1308_s5 = scalar_lea.hbm %s1948_s7, 512 }
 0x364   : > { %p1305_p11 = scmp.ne.s32.totalorder %s1812_s18, %s1304_s6  ;;  %p1309_p2 = scmp.lt.s32.totalorder %s1812_s18, %s1948_s7 }
 0x365   : > { %p1310_p13 = scmp.lt.s32.totalorder %s1308_s5, %s1304_s6 }
 0x366   : > { %p1306_p1 = pnand %p1305_p11, %p1582_p0 }
 0x367   : > { %p1311_p6 = por %p1310_p13, %p1309_p2 }
 0x368   : > { %p1307_p3 = pneg %p1306_p1 }
 0x36a   : > { %p1312_p10 = pnand %p1311_p6, %p1307_p3 }
 0x36c   : > { %1315 = shalt.err (!%p1312_p10)
}
 0x36d   : > { %978 = dma.vmem_to_hbm [thread:$0]  (%p1582_p0), %s1814_s29, 128, %s1812_s18, %s654_s11   ;;  %v648_v40 = vpop.f32.mrf.mxu1 }
 0x36f   : > { %v967_v41 = vpop.f32.mrf.mxu1 }
 0x370 PF: > { %s1949_s12 = sld [smem:[#allocation28_spill]] }
 0x371   : > { %s1950_s13 = sld [smem:[#allocation24_spill]] }
 0x372   : > { %s1951_s30 = sld [smem:[#allocation32_spill]] }
 0x376   : > { %p1006_p7 = scmp.ge.s32.totalorder %s1949_s12, 2 }
 0x377   : > { %s703_s21 = sand.u32 1, %s1950_s13  }
 0x378   : > { %p1952_p9 = scmp.ne.s32.totalorder %s1951_s30, 0  ;;  %s704_s3 = scalar_lea.sflag [#allocation7], %s703_s21 }
 0x37a   : > { %p999_p4 = pnand %p1006_p7, %p1952_p9 }
 0x37c   : > { %p1000_p5 = pneg %p999_p4 }
 0x37e   : > { %1375 = dma.done.wait (%p1000_p5), %s704_s3, 128  }
 0x37f   : > { %1377 = vsyncadd (%p1000_p5), %s704_s3, 4294967168  ;;  %s713_s23 = scalar_lea.sflag [#allocation16], %s703_s21 }
 0x380   : > { %1379 = dma.done.wait (%p1000_p5), %s713_s23, 128  }
 0x381   : > { %1381 = vsyncadd (%p1000_p5), %s713_s23, 4294967168  ;;  %s43_s25 = sadd.s32 1, %s1949_s12   ;;  %s1953_s15 = sld [smem:[#allocation23_spill]] }
 0x382   : > { %p40_p0 = scmp.ge.s32.totalorder %s43_s25, 6   ;;  %s1954_s17 = sld [smem:[#allocation34_spill]] }
 0x383   : > { %s1955_s29 = sld [smem:[#allocation33_spill]]  ;;  %s1960_s0 = smov %s1388_s1 }
 0x384   : > { %s1956_s21 = sld [smem:[#allocation26_spill]]  ;;  %s1962_s18 = smov %s1400_s19 }
 0x385   : > { %s1957_s22 = sld [smem:[#allocation27_spill]]  ;;  %s1963_s19 = smov %s1404_s20 }
 0x386   : > { %s1958_s23 = sld [smem:[#allocation29_spill]]  ;;  %42 = sbr.rel (!%p40_p0) target bundleno = 33 (0x21), region = 157 }
 0x387   : > { %s1959_s24 = sld [smem:[#allocation30_spill]]  ;;  %s1961_s1 = smov %s1953_s15 }
 0x389   : > { %s1964_s20 = smov %s1955_s29 }
 0x38b   :  { %718 = vsyncpa [#allocation6], 1 }
 0x38c   :  { %720 = vsyncpa [#allocation6 + $0x1], 1 }
 0x38d   :  { %721 = vsyncpa [#allocation9], 1 }
 0x38e   :  { %723 = vsyncpa [#allocation9 + $0x1], 1 }
 0x38f   :  { %724 = vsyncpa [#allocation12], 1 }
 0x390   :  { %726 = vsyncpa [#allocation12 + $0x1], 1 }
 0x391   :  { %727 = vsyncpa [#allocation7], 1 }
 0x392   :  { %729 = vsyncpa [#allocation7 + $0x1], 1 }
 0x393   :  { %730 = vsyncpa [#allocation16], 1 }
 0x394   :  { %732 = vsyncpa [#allocation16 + $0x1], 1 }

</bundles_post_ra>
